<compile_context>
chip_gen: v5e
topology: v5e:2x2
jax: 0.10.0
libtpu: 0.0.40
codegen_flags: <defaults>
</compile_context>

<pallas_src>
import jax
import jax.numpy as jnp
from jax.experimental import pallas as pl
from jax.experimental.pallas import tpu as pltpu


def _round_up(x: int, m: int) -> int:
    return ((x + m - 1) // m) * m


def _vmem_limit_bytes() -> int:
    """Generation-aware scoped VMEM limit with headroom for compiler scratch."""
    cap = 64 * 1024 * 1024  # conservative default = v7x physical VMEM per TC
    try:
        info = pltpu.get_tpu_info()
        cap = int(getattr(info, "vmem_capacity_bytes", cap) or cap)
    except Exception:
        pass
    # v7x (64 MiB phys) -> 40 MiB; v5e/v6e (128 MiB phys) -> 96 MiB.
    return max(32 * 1024 * 1024, min(cap - 24 * 1024 * 1024, 96 * 1024 * 1024))


def _sigmoid_f32(z):
    # One EUP transcendental; safe for large |z| (no inf in an intermediate).
    return 0.5 * jnp.tanh(0.5 * z) + 0.5


# ----------------------------------------------------------------------------
# Kernels
# ----------------------------------------------------------------------------
def _lr_kernel_resident(x_ref, w_ref, b_ref, o_ref):
    # x_ref: (tb, IP)  w_ref: (IP, OP) resident  b_ref: (1, OP) f32  o_ref: (tb, OP)
    z = jnp.dot(x_ref[...], w_ref[...], preferred_element_type=jnp.float32)
    z = z + b_ref[...]
    o_ref[...] = _sigmoid_f32(z).astype(o_ref.dtype)


def _lr_kernel_tiled(x_ref, w_ref, b_ref, o_ref, acc_ref):
    # Fallback for weights too large to stay resident.
    # x_ref: (tb, tk)  w_ref: (tk, tn)  b_ref: (1, tn)  o_ref: (tb, tn)
    # acc_ref: (tb, tn) f32, resident across the K (last, reduction) grid axis.
    k = pl.program_id(2)

    @pl.when(k == 0)
    def _():
        acc_ref[...] = jnp.zeros_like(acc_ref)

    acc_ref[...] += jnp.dot(x_ref[...], w_ref[...],
                            preferred_element_type=jnp.float32)

    @pl.when(k == pl.num_programs(2) - 1)
    def _():
        o_ref[...] = _sigmoid_f32(acc_ref[...] + b_ref[...]).astype(o_ref.dtype)


# ----------------------------------------------------------------------------
# Static parameter preparation (hoisted out of the per-call hot path)
# ----------------------------------------------------------------------------
def prepare_flatten_lr_params(weight, bias, *, use_bf16=False):
    """One-time transpose + zero-pad + cast of the nn.Linear parameters.

    weight: (op_size, ip_size)  PyTorch nn.Linear layout
    bias:   (op_size,)
    """
    op_size, ip_size = weight.shape
    assert bias.shape == (op_size,)
    compute_dtype = jnp.bfloat16 if use_bf16 else jnp.float32

    IP = _round_up(ip_size, 128)   # lane-aligned contraction dim
    OP = _round_up(op_size, 128)   # lane-dense output dim

    # (IP, OP) layout: kernel runs a plain NN matmul, no per-step transpose.
    w = jnp.zeros((IP, OP), compute_dtype).at[:ip_size, :op_size].set(
        weight.T.astype(compute_dtype))
    b = jnp.zeros((1, OP), jnp.float32).at[0, :op_size].set(
        bias.astype(jnp.float32))

    return {
        "w": w,
        "b": b,
        "ip_size": ip_size,
        "op_size": op_size,
        "compute_dtype": compute_dtype,
    }


# ----------------------------------------------------------------------------
# Forward
# ----------------------------------------------------------------------------
def flatten_lr_forward(x, params, *, tile_b=512, tile_k=512, tile_n=1024,
                       out_dtype=None, force_tiled=False):
    """sigmoid(x @ W^T + b) with prepared (padded/transposed) params."""
    B, ip_size = x.shape
    assert ip_size == params["ip_size"], "weight/input feature size mismatch"
    w, b = params["w"], params["b"]
    IP, OP = w.shape
    op_size = params["op_size"]
    compute_dtype = params["compute_dtype"]
    out_dtype = x.dtype if out_dtype is None else out_dtype

    # x: cast (bf16 path) and lane-pad along K only when needed. The batch
    # axis is never padded/copied — ragged last tile handled by the cdiv grid.
    xc = x if x.dtype == compute_dtype else x.astype(compute_dtype)
    if IP != ip_size:
        xc = jnp.pad(xc, ((0, 0), (0, IP - ip_size)))

    sub = 16 if compute_dtype == jnp.bfloat16 else 8     # vreg sublane packing
    # Cap tb so there are >= 2 batch tiles whenever B allows it (both v7x TCs
    # via the "parallel" axis; >=2 pipeline steps everywhere).
    half_b = _round_up(max(1, -(-B // 2)), sub)
    tb = max(sub, min(_round_up(tile_b, sub), half_b))
    grid_b = pl.cdiv(B, tb)

    vmem_limit = _vmem_limit_bytes()
    itemsize = jnp.dtype(compute_dtype).itemsize
    out_itemsize = jnp.dtype(out_dtype).itemsize

    # --- main path: weight resident in VMEM (typical LR head) ---------------
    resident_bytes = (2 * IP * OP * itemsize        # weight (conservative 2x)
                      + 2 * tb * IP * itemsize      # x double-buffer
                      + 2 * tb * OP * out_itemsize  # out double-buffer
                      + 2 * OP * 4)                 # bias
    if not force_tiled and resident_bytes <= vmem_limit - (4 << 20):
        out = pl.pallas_call(
            _lr_kernel_resident,
            out_shape=jax.ShapeDtypeStruct((B, OP), out_dtype),
            grid_spec=pltpu.PrefetchScalarGridSpec(
                num_scalar_prefetch=0,
                grid=(grid_b,),
                in_specs=[
                    pl.BlockSpec((tb, IP), lambda i: (i, 0)),   # x tile
                    pl.BlockSpec((IP, OP), lambda i: (0, 0)),   # weight, resident
                    pl.BlockSpec((1, OP), lambda i: (0, 0)),    # bias, resident
                ],
                out_specs=pl.BlockSpec((tb, OP), lambda i: (i, 0)),
            ),
            compiler_params=pltpu.CompilerParams(
                dimension_semantics=("parallel",),
                vmem_limit_bytes=vmem_limit,
            ),
        )(xc, w, b)
        return out[:, :op_size]

    # --- fallback: weight too large -> tile OP (N) and IP (K), K last -------
    tk = min(_round_up(tile_k, 128), IP)
    while IP % tk:
        tk -= 128
    tn = min(_round_up(tile_n, 128), OP)
    while OP % tn:
        tn -= 128

    tiled_bytes = (2 * tb * tk * itemsize + 2 * tk * tn * itemsize
                   + 2 * tn * 4 + 2 * tb * tn * out_itemsize + tb * tn * 4)
    assert tiled_bytes <= vmem_limit, (
        f"per-step VMEM footprint {tiled_bytes}B exceeds limit {vmem_limit}B; "
        "reduce tile_b / tile_n / tile_k")

    out = pl.pallas_call(
        _lr_kernel_tiled,
        out_shape=jax.ShapeDtypeStruct((B, OP), out_dtype),
        grid_spec=pltpu.PrefetchScalarGridSpec(
            num_scalar_prefetch=0,
            grid=(grid_b, OP // tn, IP // tk),
            in_specs=[
                pl.BlockSpec((tb, tk), lambda i, j, k: (i, k)),   # x
                pl.BlockSpec((tk, tn), lambda i, j, k: (k, j)),   # weight (IP, OP)
                pl.BlockSpec((1, tn), lambda i, j, k: (0, j)),    # bias
            ],
            out_specs=pl.BlockSpec((tb, tn), lambda i, j, k: (i, j)),
            scratch_shapes=[pltpu.VMEM((tb, tn), jnp.float32)],
        ),
        compiler_params=pltpu.CompilerParams(
            dimension_semantics=("parallel", "parallel", "arbitrary"),
            vmem_limit_bytes=vmem_limit,
        ),
    )(xc, w, b)
    return out[:, :op_size]


# ----------------------------------------------------------------------------
if __name__ == "__main__":
    # Small but deliberately unaligned shapes so padding, ragged-batch tiling
    # and (in the forced fallback) K/N tiling are all exercised.
    ip_size = 200
    op_size = 48
    batch = 24

    key = jax.random.PRNGKey(0)
    kx, kw, kb = jax.random.split(key, 3)

    # PyTorch nn.Linear default init: U(-1/sqrt(ip), 1/sqrt(ip))
    bound = 1.0 / (ip_size ** 0.5)
    weight = jax.random.uniform(kw, (op_size, ip_size), jnp.float32,
                                minval=-bound, maxval=bound)
    bias = jax.random.uniform(kb, (op_size,), jnp.float32,
                              minval=-bound, maxval=bound)
    x = jax.random.normal(kx, (batch, ip_size), jnp.float32)

    ref = jax.nn.sigmoid(x @ weight.T + bias)

    # Main path: f32 operands, resident weight, >=2 batch tiles.
    params_f32 = prepare_flatten_lr_params(weight, bias, use_bf16=False)
    out = jax.block_until_ready(flatten_lr_forward(x, params_f32))
    assert out.shape == (batch, op_size)
    assert jnp.allclose(out, ref, atol=1e-5, rtol=1e-5)

    # bf16-operand path (valid on v5e/v6e/v7x), f32 accumulate + epilogue.
    params_bf16 = prepare_flatten_lr_params(weight, bias, use_bf16=True)
    out_bf16 = jax.block_until_ready(flatten_lr_forward(x, params_bf16))
    assert jnp.allclose(out_bf16, ref, atol=2e-2, rtol=2e-2)

    # Forced K/N-tiled fallback (correctness-only tile sizes; exercises the
    # accumulator + pl.when init/finalize path used for very large weights).
    out_tiled = jax.block_until_ready(
        flatten_lr_forward(x, params_f32, tile_b=16, tile_k=128, tile_n=128,
                           force_tiled=True))
    assert jnp.allclose(out_tiled, ref, atol=1e-5, rtol=1e-5)

    print("KERNEL_OK")
</pallas_src>

<mosaic_0001>
module attributes {stable_mosaic.version = 11 : i64} {
  func.func @_lr_kernel_resident(%arg0: i32, %arg1: memref<16x256xf32, #tpu.memory_space<vmem>>, %arg2: memref<256x128xf32, #tpu.memory_space<vmem>>, %arg3: memref<1x128xf32, #tpu.memory_space<vmem>>, %arg4: memref<16x128xf32, #tpu.memory_space<vmem>>) attributes {dimension_semantics = [#tpu.dimension_semantics<parallel>], iteration_bounds = array<i64: 2>, scalar_prefetch = 0 : i64, scratch_operands = 0 : i64, tpu.core_type = #tpu.core_type<tc>, window_params = [{transform_indices = @transform_0, window_bounds = array<i64: 16, 256>}, {pipeline_mode = #tpu.pipeline_mode<synchronous>, transform_indices = @transform_1, window_bounds = array<i64: 256, 128>}, {pipeline_mode = #tpu.pipeline_mode<synchronous>, transform_indices = @transform_2, window_bounds = array<i64: 1, 128>}, {transform_indices = @transform_3, window_bounds = array<i64: 16, 128>}]} {
    %c0 = arith.constant 0 : index
    %c0_0 = arith.constant 0 : index
    %0 = vector.load %arg1[%c0, %c0_0] : memref<16x256xf32, #tpu.memory_space<vmem>>, vector<16x256xf32>
    %c0_1 = arith.constant 0 : index
    %c0_2 = arith.constant 0 : index
    %1 = vector.load %arg2[%c0_1, %c0_2] : memref<256x128xf32, #tpu.memory_space<vmem>>, vector<256x128xf32>
    %cst = arith.constant dense<0.000000e+00> : vector<16x128xf32>
    %2 = tpu.matmul %0, %1, %cst {dimension_numbers = #tpu.dot_dimension_numbers<[1], [0], [0], [1], [0, 0, 1, 1], [], []>} : vector<16x256xf32>, vector<256x128xf32>, vector<16x128xf32> -> vector<16x128xf32>
    %c0_3 = arith.constant 0 : index
    %c0_4 = arith.constant 0 : index
    %3 = vector.load %arg3[%c0_3, %c0_4] : memref<1x128xf32, #tpu.memory_space<vmem>>, vector<1x128xf32>
    %4 = vector.broadcast %3 : vector<1x128xf32> to vector<16x128xf32>
    %5 = arith.addf %2, %4 : vector<16x128xf32>
    %cst_5 = arith.constant 5.000000e-01 : f32
    %6 = vector.broadcast %cst_5 : f32 to vector<16x128xf32>
    %7 = arith.mulf %6, %5 : vector<16x128xf32>
    %8 = math.tanh %7 : vector<16x128xf32>
    %cst_6 = arith.constant 5.000000e-01 : f32
    %9 = vector.broadcast %cst_6 : f32 to vector<16x128xf32>
    %10 = arith.mulf %9, %8 : vector<16x128xf32>
    %cst_7 = arith.constant 5.000000e-01 : f32
    %11 = vector.broadcast %cst_7 : f32 to vector<16x128xf32>
    %12 = arith.addf %10, %11 : vector<16x128xf32>
    %c0_8 = arith.constant 0 : index
    %c0_9 = arith.constant 0 : index
    %13 = vector.load %arg4[%c0_8, %c0_9] : memref<16x128xf32, #tpu.memory_space<vmem>>, vector<16x128xf32>
    tpu.vector_store %arg4[%c0_8, %c0_9], %12 {strides = array<i32>} : memref<16x128xf32, #tpu.memory_space<vmem>>, vector<16x128xf32>,
    return
  }
  func.func @transform_0(%arg0: i32) -> (i32, i32) {
    %c0_i32 = arith.constant 0 : i32
    %c0_i32_0 = arith.constant 0 : i32
    return %arg0, %c0_i32 : i32, i32
  }
  func.func @transform_1(%arg0: i32) -> (i32, i32) {
    %c0_i32 = arith.constant 0 : i32
    %c0_i32_0 = arith.constant 0 : i32
    %c0_i32_1 = arith.constant 0 : i32
    return %c0_i32, %c0_i32_0 : i32, i32
  }
  func.func @transform_2(%arg0: i32) -> (i32, i32) {
    %c0_i32 = arith.constant 0 : i32
    %c0_i32_0 = arith.constant 0 : i32
    %c0_i32_1 = arith.constant 0 : i32
    return %c0_i32, %c0_i32_0 : i32, i32
  }
  func.func @transform_3(%arg0: i32) -> (i32, i32) {
    %c0_i32 = arith.constant 0 : i32
    %c0_i32_0 = arith.constant 0 : i32
    return %arg0, %c0_i32 : i32, i32
  }
}

</mosaic_0001>

<bundles_post_ra>
// kernel: tpu_custom_call.1
= control target key start
LH: loop header
LB: loop body
LE: loop exit
PB: predicated region body
PF: predicated region fallthrough
CT: control target
= control target key end

     0   :  { %8 = vsyncpa [#allocation3], 0  ;;  %s942_s0 = inlined_call_operand.hbm [shape: f32[24,256], index: 0, kind: input, shape index: {}]   ;;  %s943_s1 = inlined_call_operand.hbm [shape: f32[256,128], index: 1, kind: input, shape index: {}]   ;;  %s944_s2 = inlined_call_operand.vmem [shape: f32[1,128], index: 2, kind: input, shape index: {}]   ;;  %s945_s3 = inlined_call_operand.hbm [shape: f32[24,128], index: 3, kind: output, shape index: {}]  }
   0x1   :  { %10 = vsyncpa [#allocation3 + $0x1], 0 }
   0x2   :  { %11 = vsyncpa [#allocation6], 0 }
   0x3   :  { %12 = vsyncpa [#allocation4], 0 }
   0x4   :  { %14 = vsyncpa [#allocation4 + $0x1], 0  ;;  %s734_s12 = smov 0   ;;  %s736_s13 = smov 0  }
   0x5   :  { %s738_s14 = smov 0   ;;  %s740_s15 = smov 0  }
   0x6 LB: > { %s755_s16 = sadd.s32 4294967295, %s703_s15   ;;  %s430_s17 = sadd.s32 4294967294, %s703_s15   ;;  %s703_s15 = sphi %s740_s15, %s962_s15   ;;  %s699_s14 = sphi %s738_s14, %s961_s14   ;;  %s695_s13 = sphi %s736_s13, %s960_s13   ;;  %s691_s12 = sphi %s734_s12, %s959_s12  }
   0x7   : > { %s759_s18 = sadd.s32 1, %s703_s15   ;;  %s27_s19 = sadd.s32 1, %s699_s14 }
   0x8   : > { %s24_s20 = ssub.s32 %s703_s15, %s759_s18  ;;  %p34_p0 = scmp.ne.s32.totalorder %s699_s14, %s695_s13 }
   0x9   : > { %p25_p1 = scmp.eq.s32.totalorder %s24_s20, 0  ;;  %p35_p2 = scmp.eq.s32.totalorder %s703_s15, 0 }
   0xa   : > { %p40_p3 = scmp.ne.s32.totalorder %s695_s13, %s691_s12  ;;  %p947_p4 = scmp.eq.s32.totalorder %s755_s16, 0 }
   0xb   : > { %s771_s21 = scalar_select %p25_p1, %s699_s14, %s27_s19  }
   0xc   : > { %p773_p5 = por %p35_p2, %p34_p0  ;;  %p779_p6 = por %p947_p4, %p40_p3 }
   0xd   : > { %p106_p7 = scmp.eq.s32.totalorder %s755_s16, 1  ;;  %p112_p8 = scmp.eq.s32.totalorder %s430_s17, 1 }
   0xe   : > { %p431_p9 = scmp.ge.s32.totalorder %s703_s15, 1  ;;  %p119_p10 = scmp.lt.s32.totalorder %s703_s15, 3 }
   0xf   : > { %p786_p11 = por %p106_p7, %p34_p0  ;;  %p790_p12 = por %p112_p8, %p40_p3 }
  0x10   : > { %p794_p13 = pnand %p431_p9, %p119_p10  ;;  %s130_s29 = sshll.u32 %s943_s1, 4  ;;  %s131_s29 = int_to_ptr.hbm [resolvable:$true] %s130_s29 }
  0x11   : > { %s951_s25 = scalar_select %p790_p12, 1, 0 }
  0x12   : > { %p498_p1 = pneg %p794_p13  ;;  %s705_s30 = smov [#allocation5]  }
  0x13   : > { %s132_s4 = sshll.u32 %s705_s30, 4  ;;  %s706_s5 = smov 128   ;;  %s133_s4 = int_to_ptr.vmem [resolvable:$true] %s132_s4 }
  0x14   : > { %p499_p0 = pnand %p498_p1, %p947_p4  ;;  %s707_s6 = smov 8  }
  0x15   : > { %p946_p2 = scmp.ge.s32.totalorder %s703_s15, 2 }
  0x16   : > { %501 = dma.hbm_to_vmem [thread:$0]  (!%p499_p0), %s131_s29, 4096, %s133_s4, [#allocation6], %s706_s5, %s706_s5, %s707_s6  }
  0x17   : > { %145 = sbr.rel (%p946_p2) target bundleno = 64 (0x40), region = 24 }
  0x1c   : > { %148 = sbr.rel (!%p773_p5) target bundleno = 64 (0x40), region = 28  ;;  %s149_s7 = sand.u32 (%p773_p5), 1, %s699_s14  }
  0x1d   : > { %s435_s8 = sshll.u32 (%p773_p5), %s703_s15, 1  ;;  %s434_s9 = sshll.u32 (%p773_p5), %s149_s7, 5 }
  0x1e   : > { %s155_s10 = ssub.s32 (%p773_p5), 3, %s435_s8  ;;  %s815_s20 = scalar_lea.sflag (%p773_p5), [#allocation3], %s149_s7 }
  0x1f   : > { %p156_p3 = scmp.lt.s32.totalorder (%p773_p5), %s155_s10, 2  ;;  %s153_s27 = scalar_lea.vmem (%p773_p5), [#allocation2], %s434_s9 }
  0x21   : > { %s964_s10 = smov (!%p156_p3, %s155_s10), 2 }
  0x22   : > { %s456_s11 = sshll.u32 %s964_s10, 4 }
  0x23   : > { %s160_s17 = ssub.s32 32, %s456_s11 }
  0x24   : > { %s161_s19 = sshll.u32 %s160_s17, 4 }
  0x25   : > { %162 = vsyncadd %s815_s20, %s161_s19  ;;  %p818_p5 = scmp.ne.s32.totalorder %s456_s11, 0  ;;  %s458_s28 = sshll.u32 %s703_s15, 5 }
  0x26   : > { %s166_s4 = scalar_lea.hbm %s942_s0, %s458_s28  ;;  %s826_s5 = sshll.u32 %s153_s27, 4  ;;  %s171_s5 = int_to_ptr.vmem [resolvable:$true] %s826_s5 }
  0x27   : > { %s168_s6 = sshll.u32 %s166_s4, 4  ;;  %s442_s7 = sshll.u32 %s964_s10, 8  ;;  %s829_s6 = int_to_ptr.hbm [resolvable:$true] %s168_s6 }
  0x28   : > { %s583_s8 = sshra.s32 %s829_s6, 4  ;;  %s585_s9 = sshrl.u32 %s442_s7, 4  ;;  %s584_s8 = int_to_ptr.hbm [resolvable:$true] %s583_s8 }
  0x29   : > { %s590_s11 = scalar_lea.hbm %s584_s8, %s585_s9  ;;  %s594_s27 = scalar_lea.hbm %s942_s0, 48 }
  0x2a   : > { %p591_p7 = scmp.ne.s32.totalorder %s584_s8, %s590_s11  ;;  %p595_p10 = scmp.lt.s32.totalorder %s584_s8, %s942_s0 }
  0x2b   : > { %p596_p1 = scmp.lt.s32.totalorder %s594_s27, %s590_s11 }
  0x2c   : > { %p592_p8 = pnand %p591_p7, %p818_p5 }
  0x2d   : > { %p597_p0 = por %p596_p1, %p595_p10 }
  0x2e   : > { %p593_p9 = pneg %p592_p8 }
  0x30   : > { %p598_p3 = pnand %p597_p0, %p593_p9 }
  0x32   : > { %601 = shalt.err (!%p598_p3)
}
  0x33   : > { %s602_s30 = sshra.s32 %s171_s5, 4  ;;  %s708_s17 = smov [#allocation2]   ;;  %s603_s30 = int_to_ptr.vmem [resolvable:$true] %s602_s30 }
  0x34   : > { %s609_s4 = scalar_lea.vmem %s603_s30, %s585_s9  ;;  %s613_s19 = scalar_lea.vmem %s708_s17, 64 }
  0x35   : > { %p610_p7 = scmp.ne.s32.totalorder %s603_s30, %s609_s4  ;;  %p615_p4 = scmp.lt.s32.totalorder %s613_s19, %s609_s4 }
  0x37   : > { %p611_p8 = pnand %p610_p7, %p818_p5 }
  0x39   : > { %p612_p2 = pneg %p611_p8 }
  0x3b   : > { %p617_p12 = pnand %p615_p4, %p612_p2 }
  0x3d   : > { %620 = shalt.err (!%p617_p12)
}
  0x3e   : > { %s709_s8 = smov 256   ;;  %s710_s11 = smov 16  }
  0x3f   : > { %176 = dma.hbm_to_vmem [thread:$0]  (%p818_p5), %s829_s6, %s442_s7, %s171_s5, %s815_s20, %s709_s8, %s709_s8, %s710_s11  }
  0x40 PF: > { %182 = sbr.rel (%p794_p13) target bundleno = 286 (0x11e), region = 32  ;;  %s858_s9 = sand.u32 (!%p794_p13), 1, %s695_s13  }
  0x41   : > { %s444_s27 = sshll.u32 (!%p794_p13), %s858_s9, 5  ;;  %s185_s28 = scalar_lea.sflag (!%p794_p13), [#allocation3], %s858_s9 }
  0x42   : > { %s862_s29 = scalar_lea.vmem (!%p794_p13), [#allocation2], %s444_s27 }
  0x45   : > { %678 = dma.done.wait (%p779_p6), %s185_s28, 512  }
  0x46   : > { %680 = vsyncadd (%p779_p6), %s185_s28, 4294966784  ;;  %p954_p4 = scmp.eq.s32.totalorder %s755_s16, 0 }
  0x48   : > { %682 = dma.done.wait (%p954_p4), [#allocation6], 4096   ;;  %p955_p12 = pmov %p954_p4 }
  0x49   : > { %v247_v0 = vld [vmem:[#allocation5 + $0x78] sm:$0xff]  ;;  %v246_v1 = vld [vmem:[#allocation5 + $0x70] sm:$0xff]  ;;  %v245_v4 = vld [vmem:[#allocation5 + $0x68] sm:$0xff]  ;;  %s446_s10 = sshll.u32 %s858_s9, 4  ;;  %s325_s22 = scalar_lea.sflag [#allocation4], %s858_s9 }
  0x4a   : > { %684 = vsyncadd (%p955_p12), [#allocation6], 4294963200  ;;  %v263_v2 = vld [vmem:[#allocation5 + $0xf8] sm:$0xff]  ;;  %460 = vmatpush.msra.mxu2 %v247_v0  ;;  %v262_v3 = vld [vmem:[#allocation5 + $0xf0] sm:$0xff]  ;;  %268 = vmatpush.msra.mxu0 %v247_v0  ;;  %s216_s20 = scalar_lea.vmem [#allocation7], %s446_s10  ;;  %s448_s5 = sshll.u32 (%p786_p11), %s755_s16, 1 }
  0x4b   : > { %476 = vmatpush.msra.mxu3 %v263_v2  ;;  %v261_v5 = vld [vmem:[#allocation5 + $0xe8] sm:$0xff]  ;;  %291 = vmatpush.msra.mxu1 %v263_v2  ;;  %v244_v6 = vld [vmem:[#allocation5 + $0x60] sm:$0xff]  ;;  %v243_v8 = vld [vmem:[#allocation5 + $0x58] sm:$0xff]  ;;  %s333_s6 = ssub.s32 (%p786_p11), 3, %s448_s5 }
  0x4c   : > { %461 = vmatpush.msra.mxu2 %v246_v1  ;;  %269 = vmatpush.msra.mxu0 %v246_v1  ;;  %v260_v7 = vld [vmem:[#allocation5 + $0xe0] sm:$0xff]  ;;  %v259_v9 = vld [vmem:[#allocation5 + $0xd8] sm:$0xff]  ;;  %v242_v10 = vld [vmem:[#allocation5 + $0x50] sm:$0xff]  ;;  %p334_p6 = scmp.lt.s32.totalorder (%p786_p11), %s333_s6, 2 }
  0x4d   : > { %477 = vmatpush.msra.mxu3 %v262_v3  ;;  %292 = vmatpush.msra.mxu1 %v262_v3  ;;  %v258_v11 = vld [vmem:[#allocation5 + $0xd0] sm:$0xff]  ;;  %v241_v12 = vld [vmem:[#allocation5 + $0x48] sm:$0xff]  ;;  %v240_v14 = vld [vmem:[#allocation5 + $0x40] sm:$0xff] }
  0x4e   : > { %462 = vmatpush.msra.mxu2 %v245_v4  ;;  %270 = vmatpush.msra.mxu0 %v245_v4  ;;  %v257_v13 = vld [vmem:[#allocation5 + $0xc8] sm:$0xff]  ;;  %v256_v15 = vld [vmem:[#allocation5 + $0xc0] sm:$0xff]  ;;  %v239_v16 = vld [vmem:[#allocation5 + $0x38] sm:$0xff] }
  0x4f   : > { %478 = vmatpush.msra.mxu3 %v261_v5  ;;  %293 = vmatpush.msra.mxu1 %v261_v5  ;;  %v255_v17 = vld [vmem:[#allocation5 + $0xb8] sm:$0xff]  ;;  %v238_v18 = vld [vmem:[#allocation5 + $0x30] sm:$0xff]  ;;  %v237_v20 = vld [vmem:[#allocation5 + $0x28] sm:$0xff] }
  0x50   : > { %463 = vmatpush.msra.mxu2 %v244_v6  ;;  %271 = vmatpush.msra.mxu0 %v244_v6  ;;  %v254_v19 = vld [vmem:[#allocation5 + $0xb0] sm:$0xff]  ;;  %v253_v21 = vld [vmem:[#allocation5 + $0xa8] sm:$0xff]  ;;  %v236_v22 = vld [vmem:[#allocation5 + $0x20] sm:$0xff] }
  0x51   : > { %479 = vmatpush.msra.mxu3 %v260_v7  ;;  %294 = vmatpush.msra.mxu1 %v260_v7  ;;  %v252_v23 = vld [vmem:[#allocation5 + $0xa0] sm:$0xff]  ;;  %v235_v24 = vld [vmem:[#allocation5 + $0x18] sm:$0xff]  ;;  %v234_v26 = vld [vmem:[#allocation5 + $0x10] sm:$0xff] }
  0x52   : > { %464 = vmatpush.msra.mxu2 %v243_v8  ;;  %272 = vmatpush.msra.mxu0 %v243_v8  ;;  %v251_v25 = vld [vmem:[#allocation5 + $0x98] sm:$0xff]  ;;  %v250_v27 = vld [vmem:[#allocation5 + $0x90] sm:$0xff]  ;;  %v233_v28 = vld [vmem:[#allocation5 + $0x8] sm:$0xff] }
  0x53   : > { %480 = vmatpush.msra.mxu3 %v259_v9  ;;  %295 = vmatpush.msra.mxu1 %v259_v9  ;;  %v249_v29 = vld [vmem:[#allocation5 + $0x88] sm:$0xff]  ;;  %v232_v30 = vld [vmem:[#allocation5] sm:$0xff]  ;;  %v230_v32 = vld [vmem:[%s862_s29 + $0x10] sm:$0xff] }
  0x54   : > { %465 = vmatpush.msra.mxu2 %v242_v10  ;;  %273 = vmatpush.msra.mxu0 %v242_v10  ;;  %v248_v31 = vld [vmem:[#allocation5 + $0x80] sm:$0xff]  ;;  %v231_v33 = vld [vmem:[%s862_s29 + $0x18] sm:$0xff]  ;;  %v229_v35 = vld [vmem:[%s862_s29 + $0x8] sm:$0xff] }
  0x55   : > { %481 = vmatpush.msra.mxu3 %v258_v11  ;;  %296 = vmatpush.msra.mxu1 %v258_v11  ;;  %v228_v34 = vld [vmem:[%s862_s29] sm:$0xff] }
  0x56   : > { %466 = vmatpush.msra.mxu2 %v241_v12  ;;  %274 = vmatpush.msra.mxu0 %v241_v12  ;;  %v548_v36 = vld [vmem:[%s944_s2] ss:$0 sm:$0xff] }
  0x57   : > { %482 = vmatpush.msra.mxu3 %v257_v13  ;;  %297 = vmatpush.msra.mxu1 %v257_v13 }
  0x58   : > { %467 = vmatpush.msra.mxu2 %v240_v14  ;;  %275 = vmatpush.msra.mxu0 %v240_v14 }
  0x59   : > { %483 = vmatpush.msra.mxu3 %v256_v15  ;;  %298 = vmatpush.msra.mxu1 %v256_v15 }
  0x5a   : > { %468 = vmatpush.msra.mxu2 %v239_v16  ;;  %276 = vmatpush.msra.mxu0 %v239_v16 }
  0x5b   : > { %484 = vmatpush.msra.mxu3 %v255_v17  ;;  %299 = vmatpush.msra.mxu1 %v255_v17 }
  0x5c   : > { %469 = vmatpush.msra.mxu2 %v238_v18  ;;  %277 = vmatpush.msra.mxu0 %v238_v18 }
  0x5d   : > { %485 = vmatpush.msra.mxu3 %v254_v19  ;;  %300 = vmatpush.msra.mxu1 %v254_v19 }
  0x5e   : > { %470 = vmatpush.msra.mxu2 %v237_v20  ;;  %278 = vmatpush.msra.mxu0 %v237_v20 }
  0x5f   : > { %486 = vmatpush.msra.mxu3 %v253_v21  ;;  %301 = vmatpush.msra.mxu1 %v253_v21 }
  0x60   : > { %471 = vmatpush.msra.mxu2 %v236_v22  ;;  %279 = vmatpush.msra.mxu0 %v236_v22 }
  0x61   : > { %487 = vmatpush.msra.mxu3 %v252_v23  ;;  %302 = vmatpush.msra.mxu1 %v252_v23 }
  0x62   : > { %472 = vmatpush.msra.mxu2 %v235_v24  ;;  %280 = vmatpush.msra.mxu0 %v235_v24 }
  0x63   : > { %488 = vmatpush.msra.mxu3 %v251_v25  ;;  %303 = vmatpush.msra.mxu1 %v251_v25 }
  0x64   : > { %473 = vmatpush.msra.mxu2 %v234_v26  ;;  %281 = vmatpush.msra.mxu0 %v234_v26 }
  0x65   : > { %489 = vmatpush.msra.mxu3 %v250_v27  ;;  %304 = vmatpush.msra.mxu1 %v250_v27 }
  0x66   : > { %474 = vmatpush.msra.mxu2 %v233_v28  ;;  %282 = vmatpush.msra.mxu0 %v233_v28 }
  0x67   : > { %490 = vmatpush.msra.mxu3 %v249_v29  ;;  %305 = vmatpush.msra.mxu1 %v249_v29 }
  0x68   : > { %475 = vmatpush.msra.mxu2 %v232_v30  ;;  %283 = vmatpush.msra.mxu0 %v232_v30 }
  0x69   : > { %491 = vmatpush.msra.mxu3 %v248_v31  ;;  %287 = vmatmul.f32.vlgmr.msra.gmra.mxu2 %v230_v32 }
  0x6a   : > { %310 = vmatmul.f32.vlgmr.msra.gmra.mxu3 %v231_v33  ;;  %306 = vmatpush.msra.mxu1 %v248_v31 }
  0x6b   : > { %284 = vmatmul.f32.vlgmr.msra.gmra.mxu0 %v228_v34  ;;  %307 = vmatmul.f32.vlgmr.msra.gmra.mxu1 %v229_v35 }
  0xe8   : > { %v285_v37 = vpop.f32.mrf.mxu0  ;;  %v308_v38 = vpop.f32.mrf.mxu1 }
  0xe9   : > { %v286_v39 = vadd.f32 %v548_v36, %v285_v37 }
  0xeb   : > { %v309_v40 = vadd.f32 %v308_v38, %v286_v39 }
  0xec   : > { %v288_v41 = vpop.f32.mrf.mxu2 }
  0xed   : > { %v311_v42 = vpop.f32.mrf.mxu3  ;;  %v289_v43 = vadd.f32 %v548_v36, %v288_v41  ;;  %v314_v44 = vmul.f32 0.5, %v309_v40 }
  0xef   : > { %549 = vtanh.f32 %v314_v44  ;;  %v312_v45 = vadd.f32 %v311_v42, %v289_v43 }
  0xf1   : > { %v315_v46 = vmul.f32 0.5, %v312_v45 }
  0xf3   : > { %551 = vtanh.f32 %v315_v46 }
  0xf5   : > { %v550_v47 = vpop.eup %549 }
  0xf6   : > { %v318_v48 = vmul.f32 0.5, %v550_v47 }
  0xf8   : > { %v320_v49 = vadd.f32 0.5, %v318_v48 }
  0xf9   : > { %v552_v50 = vpop.eup %551 }
  0xfa   : > { %322 = vst [vmem:[%s216_s20] sm:$0xff] %v320_v49  ;;  %v319_v51 = vmul.f32 0.5, %v552_v50  ;;  %331 = sbr.rel (!%p786_p11) target bundleno = 286 (0x11e), region = 44 }
  0xfc   : > { %v321_v52 = vadd.f32 0.5, %v319_v51 }
  0xfe   : > { %323 = vst [vmem:[%s216_s20 + $0x8] sm:$0xff] %v321_v52 }
  0xff   : > { %s966_s6 = smov (!%p334_p6, %s333_s6), 2 }
 0x100   : > { %s449_s7 = sshll.u32 %s966_s6, 3 }
 0x101   : > { %s337_s30 = ssub.s32 16, %s449_s7 }
 0x102   : > { %s338_s4 = sshll.u32 %s337_s30, 4 }
 0x103   : > { %339 = vsyncadd %s325_s22, %s338_s4  ;;  %p889_p13 = scmp.ne.s32.totalorder %s449_s7, 0  ;;  %s459_s24 = sshll.u32 %s755_s16, 4 }
 0x104   : > { %s342_s11 = scalar_lea.hbm %s945_s3, %s459_s24  ;;  %s344_s27 = sshll.u32 %s216_s20, 4  ;;  %s897_s27 = int_to_ptr.vmem [resolvable:$true] %s344_s27 }
 0x105   : > { %s346_s28 = sshll.u32 %s342_s11, 4  ;;  %s453_s29 = sshll.u32 %s966_s6, 7  ;;  %s899_s28 = int_to_ptr.hbm [resolvable:$true] %s346_s28 }
 0x106   : > { %s622_s23 = sshra.s32 %s897_s27, 4  ;;  %s624_s26 = sshrl.u32 %s453_s29, 4  ;;  %s623_s23 = int_to_ptr.vmem [resolvable:$true] %s622_s23 }
 0x107   : > { %s629_s10 = scalar_lea.vmem %s623_s23, %s624_s26  ;;  %s711_s16 = smov [#allocation7]  }
 0x108   : > { %p630_p11 = scmp.ne.s32.totalorder %s623_s23, %s629_s10  ;;  %s633_s5 = scalar_lea.vmem %s711_s16, 32 }
 0x109   : > { %p635_p9 = scmp.lt.s32.totalorder %s633_s5, %s629_s10 }
 0x10a   : > { %p631_p2 = pnand %p630_p11, %p889_p13 }
 0x10c   : > { %p632_p5 = pneg %p631_p2 }
 0x10e   : > { %p637_p10 = pnand %p635_p9, %p632_p5 }
 0x110   : > { %640 = shalt.err (!%p637_p10)
}
 0x111   : > { %s641_s20 = sshra.s32 %s899_s28, 4  ;;  %s652_s24 = scalar_lea.hbm %s945_s3, 24  ;;  %s642_s20 = int_to_ptr.hbm [resolvable:$true] %s641_s20 }
 0x112   : > { %s648_s7 = scalar_lea.hbm %s642_s20, %s624_s26  ;;  %p653_p7 = scmp.lt.s32.totalorder %s642_s20, %s945_s3 }
 0x113   : > { %p649_p1 = scmp.ne.s32.totalorder %s642_s20, %s648_s7  ;;  %p654_p8 = scmp.lt.s32.totalorder %s652_s24, %s648_s7 }
 0x115   : > { %p650_p0 = pnand %p649_p1, %p889_p13  ;;  %p655_p4 = por %p654_p8, %p653_p7 }
 0x117   : > { %p651_p3 = pneg %p650_p0 }
 0x119   : > { %p656_p12 = pnand %p655_p4, %p651_p3 }
 0x11b   : > { %659 = shalt.err (!%p656_p12)
}
 0x11c   : > { %s712_s11 = smov 128   ;;  %s713_s23 = smov 8  }
 0x11d   : > { %352 = dma.vmem_to_hbm [thread:$0]  (%p889_p13), %s897_s27, %s453_s29, %s899_s28, %s325_s22, %s712_s11, %s712_s11, %s713_s23  }
 0x11e PF: > { %s361_s26 = sand.u32 1, %s691_s12   ;;  %p957_p6 = scmp.ne.s32.totalorder %s951_s25, 0 }
 0x11f   : > { %p958_p11 = scmp.ge.s32.totalorder %s703_s15, 2  ;;  %s362_s10 = scalar_lea.sflag [#allocation4], %s361_s26 }
 0x121   : > { %p503_p2 = pnand %p958_p11, %p957_p6 }
 0x123   : > { %p504_p5 = pneg %p503_p2 }
 0x125   : > { %686 = dma.done.wait (%p504_p5), %s362_s10, 256  }
 0x126   : > { %688 = vsyncadd (%p504_p5), %s362_s10, 4294967040  ;;  %p17_p9 = scmp.ge.s32.totalorder %s759_s18, 4   ;;  %s959_s12 = smov %s695_s13 }
 0x127   : > { %s960_s13 = smov %s699_s14  ;;  %s961_s14 = smov %s771_s21 }
 0x128   : > { %s962_s15 = smov %s759_s18  ;;  %19 = sbr.rel (!%p17_p9) target bundleno = 6 (0x6), region = 81 }
 0x12d   :  { %368 = vsyncpa [#allocation3], 1 }
 0x12e   :  { %370 = vsyncpa [#allocation3 + $0x1], 1 }
 0x12f   :  { %371 = vsyncpa [#allocation6], 1 }
 0x130   :  { %372 = vsyncpa [#allocation4], 1 }
 0x131   :  { %374 = vsyncpa [#allocation4 + $0x1], 1 }

</bundles_post_ra>
